<compile_context>
chip_gen: v7x
topology: tpu7x:2x2x1
jax: 0.10.0
libtpu: 0.0.40
codegen_flags: <defaults>
</compile_context>

<pallas_src>
import jax
import jax.numpy as jnp
from jax.experimental import pallas as pl
from jax.experimental.pallas import tpu as pltpu


# ----------------------------------------------------------------------------
# Single-step fused kernel: conv3x3 (one matmul) + ReLU + GAP (pool matmul)
# for all 2B images, then the 3-layer cls_head MLP.
#   patch_ref : (P_pad, 2B*S)  bf16, image blocks contiguous along lanes
#   wct_ref   : (F, P_pad)     bf16, conv weight pre-transposed
#   bc_ref    : (F, 1)         f32, conv bias (per output channel)
#   pool_ref  : (2B, 2B*S)     f32, block-diagonal 1/S pooling matrix
#   w1_ref    : (2F, H1)       bf16
#   w2_ref    : (H1, H2)       bf16
#   misc_ref  : (8, H1)        f32: row0=b1, row1[:H2]=b2, row2[:H2]=w3t, row3[0]=b3
#   logit_ref : (B, 128)       f32 lane-dense output slab
# ----------------------------------------------------------------------------
def _siamese_fused_kernel(patch_ref, wct_ref, bc_ref, pool_ref,
                          w1_ref, w2_ref, misc_ref, logit_ref):
    F = wct_ref.shape[0]
    B = logit_ref.shape[0]
    H2 = w2_ref.shape[1]

    # ---- backbone stand-in: 3x3 conv (one MXU matmul) + bias + ReLU ----------------
    conv = jnp.dot(wct_ref[...], patch_ref[...],
                   preferred_element_type=jnp.float32)               # (F, 2B*S)
    conv = jnp.maximum(conv + bc_ref[...], 0.0)

    # ---- global-avg-pool: contract lanes against the pooling matrix (MXU) ----------
    feat = jax.lax.dot_general(pool_ref[...], conv,
                               (((1,), (1,)), ((), ())),
                               preferred_element_type=jnp.float32)    # (2B, F)
    feat1 = feat[0:B, :].astype(jnp.bfloat16)                         # img1 features
    feat2 = feat[B:2 * B, :].astype(jnp.bfloat16)                     # img2 features

    # ---- cls_head (Dropout = eval-mode identity) ------------------------------------
    b1 = misc_ref[0:1, :]                                             # (1, H1)
    b2 = misc_ref[1:2, 0:H2]                                          # (1, H2)
    w3t = misc_ref[2:3, 0:H2]                                         # (1, H2)
    b3 = misc_ref[3:4, 0:1]                                           # (1, 1)

    # Linear(2F -> H1) without a lane concat: split w1 into its two F-row halves.
    h1 = (jnp.dot(feat1, w1_ref[0:F, :], preferred_element_type=jnp.float32)
          + jnp.dot(feat2, w1_ref[F:2 * F, :], preferred_element_type=jnp.float32)
          + b1)
    h1 = jnp.maximum(h1, 0.0)                                         # (B, H1)

    h2 = jnp.maximum(
        jnp.dot(h1.astype(jnp.bfloat16), w2_ref[...],
                preferred_element_type=jnp.float32) + b2, 0.0)        # (B, H2)

    # final 64 -> 1 projection: VPU mul + lane reduce against pre-transposed w3
    logits = jnp.sum(h2 * w3t, axis=-1, keepdims=True) + b3           # (B, 1)
    logit_ref[...] = jnp.broadcast_to(logits, logit_ref.shape)        # lane-dense store


# ----------------------------------------------------------------------------
# Wrapper / glue
# ----------------------------------------------------------------------------
def im2col_3x3_lane_dense(x):
    # x: (B, C, H, W) NCHW -> (B, C*9, H*W): patch dim on sublanes, spatial on lanes.
    B, C, H, W = x.shape
    xp = jnp.pad(x, ((0, 0), (0, 0), (1, 1), (1, 1)))
    cols = [xp[:, :, dy:dy + H, dx:dx + W] for dy in range(3) for dx in range(3)]
    patches = jnp.stack(cols, axis=2)            # (B, C, 9, H, W)
    return patches.reshape(B, C * 9, H * W)      # (B, P, S)


def init_params(key, in_ch=3, feat_dim=32, h1=512, h2=64):
    ks = jax.random.split(key, 8)
    s = 0.05
    return {
        "wct": s * jax.random.normal(ks[0], (feat_dim, in_ch * 9), jnp.float32),  # (F, P)
        "bc":  s * jax.random.normal(ks[1], (feat_dim, 1), jnp.float32),          # (F, 1)
        "w1":  s * jax.random.normal(ks[2], (2 * feat_dim, h1), jnp.float32),
        "b1":  s * jax.random.normal(ks[3], (1, h1), jnp.float32),
        "w2":  s * jax.random.normal(ks[4], (h1, h2), jnp.float32),
        "b2":  s * jax.random.normal(ks[5], (1, h2), jnp.float32),
        "w3t": s * jax.random.normal(ks[6], (1, h2), jnp.float32),                # pre-transposed
        "b3":  s * jax.random.normal(ks[7], (1, 1), jnp.float32),
    }


def siamese_forward(img1, img2, params):
    B, C, H, W = img1.shape
    S = H * W

    # Shared backbone weights (siamese): stack patches as [img1 batch ; img2 batch].
    patches = jnp.concatenate(
        [im2col_3x3_lane_dense(img1), im2col_3x3_lane_dense(img2)], axis=0)   # (2B, P, S)
    P = patches.shape[1]
    P_pad = -(-P // 8) * 8                      # pad K=27 -> 32 for MXU alignment
    if P_pad != P:
        patches = jnp.pad(patches, ((0, 0), (0, P_pad - P), (0, 0)))
    # (2B, P_pad, S) -> (P_pad, 2B*S): one lane-dense slab, image blocks along lanes.
    patches_all = jnp.transpose(patches, (1, 0, 2)).reshape(P_pad, 2 * B * S)
    patches_all = patches_all.astype(jnp.bfloat16)

    wct = params["wct"]
    F = wct.shape[0]
    if P_pad != P:
        wct = jnp.pad(wct, ((0, 0), (0, P_pad - P)))
    wct = wct.astype(jnp.bfloat16)
    bc = params["bc"]

    # Block-diagonal pooling matrix: pool[i, i*S:(i+1)*S] = 1/S  -> GAP on the MXU.
    pool = jnp.kron(jnp.eye(2 * B, dtype=jnp.float32),
                    jnp.full((1, S), 1.0 / S, dtype=jnp.float32))              # (2B, 2B*S)

    w1 = params["w1"].astype(jnp.bfloat16)
    w2 = params["w2"].astype(jnp.bfloat16)
    H1, H2 = params["w1"].shape[1], params["w2"].shape[1]

    # Pack the tiny head params into one (8, H1) f32 slab (single DMA).
    misc = jnp.zeros((8, H1), jnp.float32)
    misc = misc.at[0, :].set(params["b1"][0])
    misc = misc.at[1, :H2].set(params["b2"][0])
    misc = misc.at[2, :H2].set(params["w3t"][0])
    misc = misc.at[3, 0].set(params["b3"][0, 0])

    LANES = 128
    logits_pad = pl.pallas_call(
        _siamese_fused_kernel,
        out_shape=jax.ShapeDtypeStruct((B, LANES), jnp.float32),
        grid=(1,),
        in_specs=[
            pl.BlockSpec((P_pad, 2 * B * S), lambda i: (0, 0)),
            pl.BlockSpec((F, P_pad), lambda i: (0, 0)),
            pl.BlockSpec((F, 1), lambda i: (0, 0)),
            pl.BlockSpec((2 * B, 2 * B * S), lambda i: (0, 0)),
            pl.BlockSpec((2 * F, H1), lambda i: (0, 0)),
            pl.BlockSpec((H1, H2), lambda i: (0, 0)),
            pl.BlockSpec((8, H1), lambda i: (0, 0)),
        ],
        out_specs=pl.BlockSpec((B, LANES), lambda i: (0, 0)),
        compiler_params=pltpu.CompilerParams(
            dimension_semantics=("arbitrary",),
        ),
    )(patches_all, wct, bc, pool, w1, w2, misc)

    logits = logits_pad[:, :1]                   # (B, 1)
    probs = jax.nn.sigmoid(logits)               # cheap wrapper op; saves a second slab
    return probs, logits


if __name__ == "__main__":
    key = jax.random.PRNGKey(0)
    k_img1, k_img2, k_params = jax.random.split(key, 3)

    B, C, H, W = 2, 3, 16, 16
    img1 = jax.random.normal(k_img1, (B, C, H, W), jnp.float32)
    img2 = jax.random.normal(k_img2, (B, C, H, W), jnp.float32)
    params = init_params(k_params, in_ch=C)

    fwd = jax.jit(lambda a, b: siamese_forward(a, b, params))
    probs, logits = fwd(img1, img2)
    jax.block_until_ready((probs, logits))

    assert probs.shape == (B, 1) and logits.shape == (B, 1)
    assert bool(jnp.all((probs >= 0.0) & (probs <= 1.0)))
    assert bool(jnp.all(jnp.abs(probs - jax.nn.sigmoid(logits)) < 1e-5))
    print("KERNEL_OK")
</pallas_src>

<mosaic_0001>
module attributes {stable_mosaic.version = 11 : i64} {
  func.func @_siamese_fused_kernel(%arg0: i32, %arg1: memref<32x1024xbf16, #tpu.memory_space<vmem>>, %arg2: memref<32x32xbf16, #tpu.memory_space<vmem>>, %arg3: memref<32x1xf32, #tpu.memory_space<vmem>>, %arg4: memref<4x1024xf32, #tpu.memory_space<vmem>>, %arg5: memref<64x512xbf16, #tpu.memory_space<vmem>>, %arg6: memref<512x64xbf16, #tpu.memory_space<vmem>>, %arg7: memref<8x512xf32, #tpu.memory_space<vmem>>, %arg8: memref<2x128xf32, #tpu.memory_space<vmem>>) attributes {dimension_semantics = [#tpu.dimension_semantics<arbitrary>], iteration_bounds = array<i64: 1>, scalar_prefetch = 0 : i64, scratch_operands = 0 : i64, tpu.core_type = #tpu.core_type<tc>, window_params = [{pipeline_mode = #tpu.pipeline_mode<synchronous>, transform_indices = @transform_0, window_bounds = array<i64: 32, 1024>}, {pipeline_mode = #tpu.pipeline_mode<synchronous>, transform_indices = @transform_1, window_bounds = array<i64: 32, 32>}, {pipeline_mode = #tpu.pipeline_mode<synchronous>, transform_indices = @transform_2, window_bounds = array<i64: 32, 1>}, {pipeline_mode = #tpu.pipeline_mode<synchronous>, transform_indices = @transform_3, window_bounds = array<i64: 4, 1024>}, {pipeline_mode = #tpu.pipeline_mode<synchronous>, transform_indices = @transform_4, window_bounds = array<i64: 64, 512>}, {pipeline_mode = #tpu.pipeline_mode<synchronous>, transform_indices = @transform_5, window_bounds = array<i64: 512, 64>}, {pipeline_mode = #tpu.pipeline_mode<synchronous>, transform_indices = @transform_6, window_bounds = array<i64: 8, 512>}, {pipeline_mode = #tpu.pipeline_mode<synchronous>, transform_indices = @transform_7, window_bounds = array<i64: 2, 128>}]} {
    %c0 = arith.constant 0 : index
    %c0_0 = arith.constant 0 : index
    %0 = vector.load %arg2[%c0, %c0_0] : memref<32x32xbf16, #tpu.memory_space<vmem>>, vector<32x32xbf16>
    %c0_1 = arith.constant 0 : index
    %c0_2 = arith.constant 0 : index
    %1 = vector.load %arg1[%c0_1, %c0_2] : memref<32x1024xbf16, #tpu.memory_space<vmem>>, vector<32x1024xbf16>
    %cst = arith.constant dense<0.000000e+00> : vector<32x1024xf32>
    %2 = tpu.matmul %0, %1, %cst {dimension_numbers = #tpu.dot_dimension_numbers<[1], [0], [0], [1], [0, 0, 1, 1], [], []>} : vector<32x32xbf16>, vector<32x1024xbf16>, vector<32x1024xf32> -> vector<32x1024xf32>
    %c0_3 = arith.constant 0 : index
    %c0_4 = arith.constant 0 : index
    %3 = vector.load %arg3[%c0_3, %c0_4] : memref<32x1xf32, #tpu.memory_space<vmem>>, vector<32x1xf32>
    %4 = vector.broadcast %3 : vector<32x1xf32> to vector<32x1024xf32>
    %5 = arith.addf %2, %4 : vector<32x1024xf32>
    %cst_5 = arith.constant 0.000000e+00 : f32
    %6 = vector.broadcast %cst_5 : f32 to vector<32x1024xf32>
    %7 = arith.maximumf %5, %6 : vector<32x1024xf32>
    %c0_6 = arith.constant 0 : index
    %c0_7 = arith.constant 0 : index
    %8 = vector.load %arg4[%c0_6, %c0_7] : memref<4x1024xf32, #tpu.memory_space<vmem>>, vector<4x1024xf32>
    %cst_8 = arith.constant dense<0.000000e+00> : vector<4x32xf32>
    %9 = tpu.matmul %8, %7, %cst_8 {dimension_numbers = #tpu.dot_dimension_numbers<[1], [1], [0], [0], [0, 0, 1, 0], [], []>} : vector<4x1024xf32>, vector<32x1024xf32>, vector<4x32xf32> -> vector<4x32xf32>
    %10 = vector.extract_strided_slice %9 {offsets = [0, 0], sizes = [2, 32], strides = [1, 1]} : vector<4x32xf32> to vector<2x32xf32>
    %11 = arith.truncf %10 : vector<2x32xf32> to vector<2x32xbf16>
    %12 = vector.extract_strided_slice %9 {offsets = [2, 0], sizes = [2, 32], strides = [1, 1]} : vector<4x32xf32> to vector<2x32xf32>
    %13 = arith.truncf %12 : vector<2x32xf32> to vector<2x32xbf16>
    %c0_9 = arith.constant 0 : index
    %c0_10 = arith.constant 0 : index
    %14 = vector.load %arg7[%c0_9, %c0_10] : memref<8x512xf32, #tpu.memory_space<vmem>>, vector<1x512xf32>
    %c1 = arith.constant 1 : index
    %c0_11 = arith.constant 0 : index
    %15 = vector.load %arg7[%c1, %c0_11] : memref<8x512xf32, #tpu.memory_space<vmem>>, vector<1x64xf32>
    %c2 = arith.constant 2 : index
    %c0_12 = arith.constant 0 : index
    %16 = vector.load %arg7[%c2, %c0_12] : memref<8x512xf32, #tpu.memory_space<vmem>>, vector<1x64xf32>
    %c3 = arith.constant 3 : index
    %c0_13 = arith.constant 0 : index
    %17 = vector.load %arg7[%c3, %c0_13] : memref<8x512xf32, #tpu.memory_space<vmem>>, vector<1x1xf32>
    %c0_14 = arith.constant 0 : index
    %c0_15 = arith.constant 0 : index
    %18 = vector.load %arg5[%c0_14, %c0_15] : memref<64x512xbf16, #tpu.memory_space<vmem>>, vector<32x512xbf16>
    %cst_16 = arith.constant dense<0.000000e+00> : vector<2x512xf32>
    %19 = tpu.matmul %11, %18, %cst_16 {dimension_numbers = #tpu.dot_dimension_numbers<[1], [0], [0], [1], [0, 0, 1, 1], [], []>} : vector<2x32xbf16>, vector<32x512xbf16>, vector<2x512xf32> -> vector<2x512xf32>
    %c32 = arith.constant 32 : index
    %c0_17 = arith.constant 0 : index
    %20 = vector.load %arg5[%c32, %c0_17] : memref<64x512xbf16, #tpu.memory_space<vmem>>, vector<32x512xbf16>
    %cst_18 = arith.constant dense<0.000000e+00> : vector<2x512xf32>
    %21 = tpu.matmul %13, %20, %cst_18 {dimension_numbers = #tpu.dot_dimension_numbers<[1], [0], [0], [1], [0, 0, 1, 1], [], []>} : vector<2x32xbf16>, vector<32x512xbf16>, vector<2x512xf32> -> vector<2x512xf32>
    %22 = arith.addf %19, %21 : vector<2x512xf32>
    %23 = vector.broadcast %14 : vector<1x512xf32> to vector<2x512xf32>
    %24 = arith.addf %22, %23 : vector<2x512xf32>
    %cst_19 = arith.constant 0.000000e+00 : f32
    %25 = vector.broadcast %cst_19 : f32 to vector<2x512xf32>
    %26 = arith.maximumf %24, %25 : vector<2x512xf32>
    %27 = arith.truncf %26 : vector<2x512xf32> to vector<2x512xbf16>
    %c0_20 = arith.constant 0 : index
    %c0_21 = arith.constant 0 : index
    %28 = vector.load %arg6[%c0_20, %c0_21] : memref<512x64xbf16, #tpu.memory_space<vmem>>, vector<512x64xbf16>
    %cst_22 = arith.constant dense<0.000000e+00> : vector<2x64xf32>
    %29 = tpu.matmul %27, %28, %cst_22 {dimension_numbers = #tpu.dot_dimension_numbers<[1], [0], [0], [1], [0, 0, 1, 1], [], []>} : vector<2x512xbf16>, vector<512x64xbf16>, vector<2x64xf32> -> vector<2x64xf32>
    %30 = vector.broadcast %15 : vector<1x64xf32> to vector<2x64xf32>
    %31 = arith.addf %29, %30 : vector<2x64xf32>
    %cst_23 = arith.constant 0.000000e+00 : f32
    %32 = vector.broadcast %cst_23 : f32 to vector<2x64xf32>
    %33 = arith.maximumf %31, %32 : vector<2x64xf32>
    %34 = vector.broadcast %16 : vector<1x64xf32> to vector<2x64xf32>
    %35 = arith.mulf %33, %34 : vector<2x64xf32>
    %cst_24 = arith.constant dense<0.000000e+00> : vector<2xf32>
    %36 = vector.multi_reduction <add>, %35, %cst_24 [1] : vector<2x64xf32> to vector<2xf32>
    %37 = vector.shape_cast %36 : vector<2xf32> to vector<2x1xf32>
    %38 = vector.broadcast %17 : vector<1x1xf32> to vector<2x1xf32>
    %39 = arith.addf %37, %38 : vector<2x1xf32>
    %40 = vector.shape_cast %39 : vector<2x1xf32> to vector<2x1xf32>
    %41 = vector.broadcast %40 : vector<2x1xf32> to vector<2x128xf32>
    %c0_25 = arith.constant 0 : index
    %c0_26 = arith.constant 0 : index
    %42 = vector.load %arg8[%c0_25, %c0_26] : memref<2x128xf32, #tpu.memory_space<vmem>>, vector<2x128xf32>
    tpu.vector_store %arg8[%c0_25, %c0_26], %41 {strides = array<i32>} : memref<2x128xf32, #tpu.memory_space<vmem>>, vector<2x128xf32>,
    return
  }
  func.func @transform_0(%arg0: i32) -> (i32, i32) {
    %c0_i32 = arith.constant 0 : i32
    %c0_i32_0 = arith.constant 0 : i32
    %c0_i32_1 = arith.constant 0 : i32
    return %c0_i32, %c0_i32_0 : i32, i32
  }
  func.func @transform_1(%arg0: i32) -> (i32, i32) {
    %c0_i32 = arith.constant 0 : i32
    %c0_i32_0 = arith.constant 0 : i32
    %c0_i32_1 = arith.constant 0 : i32
    return %c0_i32, %c0_i32_0 : i32, i32
  }
  func.func @transform_2(%arg0: i32) -> (i32, i32) {
    %c0_i32 = arith.constant 0 : i32
    %c0_i32_0 = arith.constant 0 : i32
    %c0_i32_1 = arith.constant 0 : i32
    return %c0_i32, %c0_i32_0 : i32, i32
  }
  func.func @transform_3(%arg0: i32) -> (i32, i32) {
    %c0_i32 = arith.constant 0 : i32
    %c0_i32_0 = arith.constant 0 : i32
    %c0_i32_1 = arith.constant 0 : i32
    return %c0_i32, %c0_i32_0 : i32, i32
  }
  func.func @transform_4(%arg0: i32) -> (i32, i32) {
    %c0_i32 = arith.constant 0 : i32
    %c0_i32_0 = arith.constant 0 : i32
    %c0_i32_1 = arith.constant 0 : i32
    return %c0_i32, %c0_i32_0 : i32, i32
  }
  func.func @transform_5(%arg0: i32) -> (i32, i32) {
    %c0_i32 = arith.constant 0 : i32
    %c0_i32_0 = arith.constant 0 : i32
    %c0_i32_1 = arith.constant 0 : i32
    return %c0_i32, %c0_i32_0 : i32, i32
  }
  func.func @transform_6(%arg0: i32) -> (i32, i32) {
    %c0_i32 = arith.constant 0 : i32
    %c0_i32_0 = arith.constant 0 : i32
    %c0_i32_1 = arith.constant 0 : i32
    return %c0_i32, %c0_i32_0 : i32, i32
  }
  func.func @transform_7(%arg0: i32) -> (i32, i32) {
    %c0_i32 = arith.constant 0 : i32
    %c0_i32_0 = arith.constant 0 : i32
    %c0_i32_1 = arith.constant 0 : i32
    return %c0_i32, %c0_i32_0 : i32, i32
  }
}

</mosaic_0001>

<bundles_post_ra>
// kernel: _lambda_.1
= control target key start
LH: loop header
LB: loop body
LE: loop exit
PB: predicated region body
PF: predicated region fallthrough
CT: control target
= control target key end

     0   :  { %v1591_v3 = vmov 0   ;;  %vm161_vm0 = vcmask 261120   ;;  %vm1352_vm1 = vcmask 517120   ;;  %s1945_s0 = inlined_call_operand.vmem [shape: bf16[32,1024], index: 0, kind: input, shape index: {}]   ;;  %s1946_s1 = inlined_call_operand.vmem [shape: bf16[32,32], index: 1, kind: input, shape index: {}]   ;;  %s1947_s2 = inlined_call_operand.vmem [shape: f32[32,1], index: 2, kind: input, shape index: {}]   ;;  %s1948_s3 = inlined_call_operand.vmem [shape: f32[4,1024], index: 3, kind: input, shape index: {}]   ;;  %s1949_s4 = inlined_call_operand.vmem [shape: bf16[64,512], index: 4, kind: input, shape index: {}]   ;;  %s1950_s5 = inlined_call_operand.vmem [shape: bf16[512,64], index: 5, kind: input, shape index: {}]   ;;  %s1951_s6 = inlined_call_operand.vmem [shape: f32[8,512], index: 6, kind: input, shape index: {}]   ;;  %s1952_s7 = inlined_call_operand.vmem [shape: f32[2,128], index: 7, kind: output, shape index: {}]  }
   0x1   :  { %v31_v0 = vld [vmem:[%s1945_s0] sm:$0xff]  ;;  %v32_v2 = vld [vmem:[%s1945_s0 + $0x8] sm:$0xff]  ;;  %200 = vmatprep.mubr.bf16.mxu0 %v1591_v3  ;;  %253 = vmatprep.mubr.bf16.mxu1 %v1591_v3  ;;  %v33_v15 = vld [vmem:[%s1945_s0 + $0x10] sm:$0xff] }
   0x2   :  { %v35_v1 = vld [vmem:[%s1945_s0 + $0x20] sm:$0xff]  ;;  %v36_v5 = vld [vmem:[%s1945_s0 + $0x28] sm:$0xff]  ;;  %1527 = vset.pattern.permute.xlu0 %v1591_v3  ;;  %1528 = vset.pattern.permute.xlu1 %v1591_v3  ;;  %v37_v17 = vld [vmem:[%s1945_s0 + $0x30] sm:$0xff] }
   0x3   :  { %v1370_v4 = vcombine.high %v31_v0, %v35_v1  ;;  %v1369_v6 = vcombine.low %v31_v0, %v35_v1  ;;  %v39_v7 = vld [vmem:[%s1945_s0 + $0x40] sm:$0xff]  ;;  %v1372_v9 = vcombine.high %v32_v2, %v36_v5  ;;  %v1371_v10 = vcombine.low %v32_v2, %v36_v5  ;;  %v40_v12 = vld [vmem:[%s1945_s0 + $0x48] sm:$0xff]  ;;  %v34_v21 = vld [vmem:[%s1945_s0 + $0x18] sm:$0xff] }
   0x4   :  { %v43_v8 = vld [vmem:[%s1945_s0 + $0x60] sm:$0xff]  ;;  %v44_v13 = vld [vmem:[%s1945_s0 + $0x68] sm:$0xff]  ;;  %v1374_v19 = vcombine.high %v33_v15, %v37_v17  ;;  %v38_v22 = vld [vmem:[%s1945_s0 + $0x38] sm:$0xff]  ;;  %v1373_v27 = vcombine.low %v33_v15, %v37_v17 }
   0x5   :  { %v1378_v11 = vcombine.high %v39_v7, %v43_v8  ;;  %168 = vmatprep.subr.bf16.mxu0 %v1370_v4  ;;  %v1380_v14 = vcombine.high %v40_v12, %v44_v13  ;;  %221 = vmatprep.subr.bf16.mxu1 %v1372_v9  ;;  %v1377_v16 = vcombine.low %v39_v7, %v43_v8  ;;  %v1529_v20 = vld [vmem:[%s1946_s1] sm:$0xff]   ;;  %v41_v23 = vld [vmem:[%s1945_s0 + $0x50] sm:$0xff]  ;;  %v42_v28 = vld [vmem:[%s1945_s0 + $0x58] sm:$0xff] }
   0x6   :  { %169 = vmatpush1.bf16.msra.mxu0 %v1369_v6  ;;  %222 = vmatpush1.bf16.msra.mxu1 %v1371_v10  ;;  %v1379_v18 = vcombine.low %v40_v12, %v44_v13  ;;  %v45_v24 = vld [vmem:[%s1945_s0 + $0x70] sm:$0xff]  ;;  %v1376_v25 = vcombine.high %v34_v21, %v38_v22  ;;  %v47_v26 = vld [vmem:[%s1947_s2] sm:$0xff]  ;;  %v46_v29 = vld [vmem:[%s1945_s0 + $0x78] sm:$0xff]  ;;  %v1375_v32 = vcombine.low %v34_v21, %v38_v22 }
   0x7   :  { %170 = vmatprep.subr.bf16.mxu0 %v1378_v11  ;;  %223 = vmatprep.subr.bf16.mxu1 %v1380_v14  ;;  %v49_v30 = vld [vmem:[%s1947_s2 + $0x10] sm:$0xff]  ;;  %v1382_v31 = vcombine.high %v41_v23, %v45_v24  ;;  %v1384_v33 = vcombine.high %v42_v28, %v46_v29  ;;  %v1381_v34 = vcombine.low %v41_v23, %v45_v24  ;;  %v48_v35 = vld [vmem:[%s1947_s2 + $0x8] sm:$0xff]  ;;  %v50_v36 = vld [vmem:[%s1947_s2 + $0x18] sm:$0xff] }
   0x8   :  { %53 = vperm.xlu0 %1527, %v47_v26   ;;  %63 = vperm.xlu1 %1528, %v49_v30   ;;  %v1383_v37 = vcombine.low %v42_v28, %v46_v29  ;;  %v1530_v38 = vld [vmem:[%s1946_s1 + $0x8] sm:$0xff]   ;;  %v1726_v41 = vld [vmem:[%s1948_s3] sm:$0xff] }
   0x9   :  { %v1719_v39 = vld [vmem:[%s1948_s3 + $0x8] sm:$0xff]  ;;  %v420_v42 = vcombine.high %v1726_v41, %v1726_v41 }
   0xa   :  { %171 = vmatpush1.bf16.msra.mxu0 %v1377_v16  ;;  %224 = vmatpush1.bf16.msra.mxu1 %v1379_v18  ;;  %v421_v40 = vcombine.high %v1719_v39, %v1719_v39 }
   0xb   :  { %274 = vmatprep.subr.bf16.mxu0 %v1374_v19  ;;  %327 = vmatprep.subr.bf16.mxu1 %v1376_v25 }
   0xc   :  { %58 = vperm.xlu0 %1527, %v48_v35   ;;  %68 = vperm.xlu1 %1528, %v50_v36  }
   0xd   :  { %1385 = vmatmul.mubr.msk.bf16.vlgmr.msra.gmra.mrb[0].mxu0 %vm161_vm0, %v1529_v20  ;;  %1387 = vmatmul.mubr.msk.bf16.vlgmr.msra.gmra.mrb[0].mxu1 %vm161_vm0, %v1529_v20 }
   0xe   :  { %275 = vmatpush1.bf16.msra.mxu0 %v1373_v27  ;;  %210 = vmatprep.mubr.bf16.mxu0 %v1591_v3 }
   0xf   :  { %263 = vmatprep.mubr.bf16.mxu1 %v1591_v3  ;;  %276 = vmatprep.subr.bf16.mxu0 %v1382_v31 }
  0x10   :  { %328 = vmatpush1.bf16.msra.mxu1 %v1375_v32 }
  0x11   :  { %329 = vmatprep.subr.bf16.mxu1 %v1384_v33 }
  0x12   :  { %277 = vmatpush1.bf16.msra.mxu0 %v1381_v34 }
  0x14   :  { %330 = vmatpush1.bf16.msra.mxu1 %v1383_v37 }
  0x15   :  { %1386 = vmatmul.mubr.msk.bf16.gmra.mrb[4].mxu0 %vm161_vm0, %v1530_v38  ;;  %1388 = vmatmul.mubr.msk.bf16.gmra.mrb[4].mxu1 %vm161_vm0, %v1530_v38 }
  0x16   :  { %306 = vmatprep.mubr.bf16.mxu0 %v1591_v3  ;;  %359 = vmatprep.mubr.bf16.mxu1 %v1591_v3 }
  0x1d   :  { %1389 = vmatmul.mubr.msk.bf16.vlgmr.msra.gmra.mrb[8].mxu0 %vm161_vm0, %v1529_v20  ;;  %1391 = vmatmul.mubr.msk.bf16.vlgmr.msra.gmra.mrb[8].mxu1 %vm161_vm0, %v1529_v20 }
  0x1e   :  { %316 = vmatprep.mubr.bf16.mxu0 %v1591_v3  ;;  %369 = vmatprep.mubr.bf16.mxu1 %v1591_v3 }
  0x25   :  { %1390 = vmatmul.mubr.msk.bf16.gmra.mrb[12].mxu0 %vm161_vm0, %v1530_v38  ;;  %1392 = vmatmul.mubr.msk.bf16.gmra.mrb[12].mxu1 %vm161_vm0, %v1530_v38 }
  0x26   :  { %562 = vmatprep.mubr.f32.mxu0 %v421_v40  ;;  %492 = vmatprep.mubr.f32.mxu1 %v420_v42  ;;  %v1537_v42 = vld [vmem:[%s1949_s4 + $0x44] ss:$16 sps:$4 sm:$0xff]  }
  0x87   :  { %v1730_v43 = vpop.permute.xlu0 %53  ;;  %v1732_v44 = vpop.permute.xlu1 %63 }
  0x8b   :  { %v1734_v45 = vpop.permute.xlu0 %58  ;;  %v1744_v10 = vpop.permute.xlu1 %68 }
  0xe0   :  { %v202_v46 = vpop.f32.mrb[0].mxu0  ;;  %v255_v48 = vpop.f32.mrb[0].mxu1 }
  0xe1   :  { %v203_v47 = vadd.f32 %v202_v46, %v1730_v43  ;;  %v204_v49 = vpop.f32.mrb[1].mxu0  ;;  %v256_v50 = vadd.f32 %v255_v48, %v1730_v43  ;;  %v257_v52 = vpop.f32.mrb[1].mxu1 }
  0xe2   :  { %v205_v51 = vadd.f32 %v204_v49, %v1730_v43  ;;  %v206_v53 = vpop.f32.mrb[2].mxu0  ;;  %v258_v54 = vadd.f32 %v257_v52, %v1730_v43  ;;  %v259_v56 = vpop.f32.mrb[2].mxu1 }
  0xe3   :  { %v207_v55 = vadd.f32 %v206_v53, %v1734_v45  ;;  %v208_v57 = vpop.f32.mrb[3].mxu0  ;;  %v260_v58 = vadd.f32 %v259_v56, %v1734_v45  ;;  %v261_v60 = vpop.f32.mrb[3].mxu1  ;;  %v380_v61 = vmax.f32 %v203_v47, 0.0  ;;  %v382_v0 = vmax.f32 %v256_v50, 0.0 }
  0xe4   :  { %v209_v59 = vadd.f32 %v208_v57, %v1734_v45  ;;  %v262_v63 = vadd.f32 %v261_v60, %v1734_v45  ;;  %v381_v1 = vmax.f32 %v205_v51, 0.0  ;;  %v383_v5 = vmax.f32 %v258_v54, 0.0 }
  0xe5   :  { %v388_v62 = vmax.f32 %v207_v55, 0.0  ;;  %v390_v2 = vmax.f32 %v260_v58, 0.0 }
  0xe6   :  { %v389_v4 = vmax.f32 %v209_v59, 0.0  ;;  %v391_v7 = vmax.f32 %v262_v63, 0.0 }
  0xe7   :  { %v1491_v6 = vpack.c.bf16 %v388_v62, %v380_v61  ;;  %v1499_v8 = vpack.c.bf16 %v390_v2, %v382_v0 }
  0xe8   :  { %v1489_v9 = vpack.c.bf16 %v389_v4, %v381_v1  ;;  %v212_v11 = vpop.f32.mrb[4].mxu0  ;;  %v1497_v12 = vpack.c.bf16 %v391_v7, %v383_v5  ;;  %v265_v14 = vpop.f32.mrb[4].mxu1 }
  0xe9   :  { %v213_v13 = vadd.f32 %v212_v11, %v1732_v44  ;;  %v214_v15 = vpop.f32.mrb[5].mxu0  ;;  %v266_v16 = vadd.f32 %v265_v14, %v1732_v44  ;;  %v267_v18 = vpop.f32.mrb[5].mxu1 }
  0xea   :  { %v215_v17 = vadd.f32 %v214_v15, %v1732_v44  ;;  %v216_v19 = vpop.f32.mrb[6].mxu0  ;;  %1490 = vmatprep.subr.bf16.mxu1 %v1489_v9  ;;  %v268_v20 = vadd.f32 %v267_v18, %v1732_v44  ;;  %v269_v22 = vpop.f32.mrb[6].mxu1  ;;  %1498 = vmatprep.subr.bf16.mxu0 %v1497_v12 }
  0xeb   :  { %v217_v21 = vadd.f32 %v216_v19, %v1744_v10  ;;  %v218_v23 = vpop.f32.mrb[7].mxu0  ;;  %1492 = vmatpush1.bf16.xpose.msra.mxu1 %v1491_v6  ;;  %v270_v24 = vadd.f32 %v269_v22, %v1744_v10  ;;  %v271_v26 = vpop.f32.mrb[7].mxu1  ;;  %1500 = vmatpush1.bf16.xpose.msra.mxu0 %v1499_v8  ;;  %v396_v27 = vmax.f32 %v213_v13, 0.0  ;;  %v398_v30 = vmax.f32 %v266_v16, 0.0  ;;  %v1535_v8 = vld [vmem:[%s1949_s4 + $0x40] ss:$16 sps:$4 sm:$0xff]  }
  0xec   :  { %v219_v25 = vadd.f32 %v218_v23, %v1744_v10  ;;  %v272_v29 = vadd.f32 %v271_v26, %v1744_v10  ;;  %v397_v31 = vmax.f32 %v215_v17, 0.0  ;;  %v399_v34 = vmax.f32 %v268_v20, 0.0 }
  0xed   :  { %v404_v28 = vmax.f32 %v217_v21, 0.0  ;;  %v406_v32 = vmax.f32 %v270_v24, 0.0 }
  0xee   :  { %v405_v33 = vmax.f32 %v219_v25, 0.0  ;;  %v407_v36 = vmax.f32 %v272_v29, 0.0 }
  0xef   :  { %v1495_v35 = vpack.c.bf16 %v404_v28, %v396_v27  ;;  %v1503_v37 = vpack.c.bf16 %v406_v32, %v398_v30 }
  0xf0   :  { %v1493_v38 = vpack.c.bf16 %v405_v33, %v397_v31  ;;  %v308_v40 = vpop.f32.mrb[8].mxu0  ;;  %v1501_v46 = vpack.c.bf16 %v407_v36, %v399_v34  ;;  %v361_v48 = vpop.f32.mrb[8].mxu1 }
  0xf1   :  { %v309_v47 = vadd.f32 %v308_v40, %v1730_v43  ;;  %v310_v49 = vpop.f32.mrb[9].mxu0  ;;  %v362_v50 = vadd.f32 %v361_v48, %v1730_v43  ;;  %v363_v52 = vpop.f32.mrb[9].mxu1  ;;  %v1540_v40 = vld [vmem:[%s1949_s4 + $0x64] ss:$16 sps:$4 sm:$0xff]  }
  0xf2   :  { %v311_v51 = vadd.f32 %v310_v49, %v1730_v43  ;;  %v312_v53 = vpop.f32.mrb[10].mxu0  ;;  %1494 = vmatprep.subr.bf16.mxu1 %v1493_v38  ;;  %v364_v54 = vadd.f32 %v363_v52, %v1730_v43  ;;  %v365_v56 = vpop.f32.mrb[10].mxu1  ;;  %1502 = vmatprep.subr.bf16.mxu0 %v1501_v46  ;;  %v414_v43 = vld [vmem:[%s1948_s3 + $0x10] sm:$0xff]  ;;  %v415_v38 = vld [vmem:[%s1948_s3 + $0x18] sm:$0xff] }
  0xf3   :  { %v313_v55 = vadd.f32 %v312_v53, %v1734_v45  ;;  %v314_v57 = vpop.f32.mrb[11].mxu0  ;;  %1496 = vmatpush1.bf16.xpose.msra.mxu1 %v1495_v35  ;;  %v366_v58 = vadd.f32 %v365_v56, %v1734_v45  ;;  %v367_v60 = vpop.f32.mrb[11].mxu1  ;;  %1504 = vmatpush1.bf16.xpose.msra.mxu0 %v1503_v37  ;;  %v384_v61 = vmax.f32 %v309_v47, 0.0  ;;  %v386_v0 = vmax.f32 %v362_v50, 0.0  ;;  %v1543_v46 = vld [vmem:[%s1949_s4 + $0x4c] ss:$16 sps:$4 sm:$0xff]  }
  0xf4   :  { %v315_v59 = vadd.f32 %v314_v57, %v1734_v45  ;;  %774 = vmatprep.subr.bf16.mxu1 %v1537_v42  ;;  %v368_v63 = vadd.f32 %v367_v60, %v1734_v45  ;;  %v385_v1 = vmax.f32 %v311_v51, 0.0  ;;  %v387_v5 = vmax.f32 %v364_v54, 0.0  ;;  %v1538_v42 = vld [vmem:[%s1949_s4 + $0x60] ss:$16 sps:$4 sm:$0xff]   ;;  %v1541_v53 = vld [vmem:[%s1949_s4 + $0x48] ss:$16 sps:$4 sm:$0xff]  }
  0xf5   :  { %v392_v62 = vmax.f32 %v313_v55, 0.0  ;;  %v394_v2 = vmax.f32 %v366_v58, 0.0  ;;  %v422_v13 = vcombine.high %v414_v43, %v414_v43  ;;  %v1546_v55 = vld [vmem:[%s1949_s4 + $0x6c] ss:$16 sps:$4 sm:$0xff]   ;;  %v1544_v56 = vld [vmem:[%s1949_s4 + $0x68] ss:$16 sps:$4 sm:$0xff]  }
  0xf6   :  { %v393_v4 = vmax.f32 %v315_v59, 0.0  ;;  %v395_v7 = vmax.f32 %v368_v63, 0.0  ;;  %v1549_v57 = vld [vmem:[%s1949_s4 + $0x4] ss:$16 sps:$4 sm:$0xff]   ;;  %v1547_v58 = vld [vmem:[%s1949_s4] ss:$16 sps:$4 sm:$0xff]  }
  0xf7   :  { %v1507_v6 = vpack.c.bf16 %v392_v62, %v384_v61  ;;  %v1515_v9 = vpack.c.bf16 %v394_v2, %v386_v0  ;;  %v1552_v59 = vld [vmem:[%s1949_s4 + $0x24] ss:$16 sps:$4 sm:$0xff]   ;;  %v1550_v60 = vld [vmem:[%s1949_s4 + $0x20] ss:$16 sps:$4 sm:$0xff]   ;;  %v1555_v61 = vld [vmem:[%s1949_s4 + $0xc] ss:$16 sps:$4 sm:$0xff]  }
  0xf8   :  { %v1505_v11 = vpack.c.bf16 %v393_v4, %v385_v1  ;;  %v318_v12 = vpop.f32.mrb[12].mxu0  ;;  %v1513_v45 = vpack.c.bf16 %v395_v7, %v387_v5  ;;  %v371_v15 = vpop.f32.mrb[12].mxu1  ;;  %v1553_v62 = vld [vmem:[%s1949_s4 + $0x8] ss:$16 sps:$4 sm:$0xff]   ;;  %v1558_v63 = vld [vmem:[%s1949_s4 + $0x2c] ss:$16 sps:$4 sm:$0xff]  }
  0xf9   :  { %v319_v14 = vadd.f32 %v318_v12, %v1732_v44  ;;  %v320_v16 = vpop.f32.mrb[13].mxu0  ;;  %v372_v17 = vadd.f32 %v371_v15, %v1732_v44  ;;  %v373_v19 = vpop.f32.mrb[13].mxu1  ;;  %v1559_v0 = vld [vmem:[%s1950_s5 + $0x40] sm:$0xff]   ;;  %v1561_v2 = vld [vmem:[%s1950_s5 + $0x48] sm:$0xff]   ;;  %v1563_v4 = vld [vmem:[%s1950_s5 + $0x50] sm:$0xff]  }
  0xfa   :  { %v321_v18 = vadd.f32 %v320_v16, %v1732_v44  ;;  %v322_v20 = vpop.f32.mrb[14].mxu0  ;;  %1506 = vmatprep.subr.bf16.mxu0 %v1505_v11  ;;  %493 = vmatmul.mubr.f32.vlgmr.msra.gmra.mrb[16].mxu1 %v1726_v41  ;;  %v374_v21 = vadd.f32 %v373_v19, %v1732_v44  ;;  %v375_v23 = vpop.f32.mrb[14].mxu1  ;;  %v1560_v1 = vld [vmem:[%s1950_s5] sm:$0xff]   ;;  %v1569_v11 = vld [vmem:[%s1950_s5 + $0x18] sm:$0xff]   ;;  %v1570_v12 = vld [vmem:[%s1950_s5 + $0x88] sm:$0xff]  }
  0xfb   :  { %v323_v22 = vadd.f32 %v322_v20, %v1744_v10  ;;  %v324_v24 = vpop.f32.mrb[15].mxu0  ;;  %563 = vmatmul.mubr.f32.vlgmr.msra.gmra.mrb[16].mxu0 %v1719_v39  ;;  %775 = vmatpush1.bf16.msra.mxu1 %v1535_v8  ;;  %v376_v25 = vadd.f32 %v375_v23, %v1744_v10  ;;  %v377_v27 = vpop.f32.mrb[15].mxu1  ;;  %v400_v28 = vmax.f32 %v319_v14, 0.0  ;;  %v402_v44 = vmax.f32 %v372_v17, 0.0  ;;  %v1564_v5 = vld [vmem:[%s1950_s5 + $0xc0] sm:$0xff]   ;;  %v1567_v8 = vld [vmem:[%s1950_s5 + $0x58] sm:$0xff]  }
  0xfc   :  { %v325_v26 = vadd.f32 %v324_v24, %v1744_v10  ;;  %1508 = vmatpush1.bf16.xpose.msra.mxu0 %v1507_v6  ;;  %632 = vmatprep.mubr.f32.mxu0 %v422_v13  ;;  %v378_v41 = vadd.f32 %v377_v27, %v1744_v10  ;;  %v401_v30 = vmax.f32 %v321_v18, 0.0  ;;  %v403_v33 = vmax.f32 %v374_v21, 0.0  ;;  %v1565_v6 = vld [vmem:[%s1950_s5 + $0x10] sm:$0xff]   ;;  %v1566_v7 = vld [vmem:[%s1950_s5 + $0x80] sm:$0xff]   ;;  %v1575_v16 = vld [vmem:[%s1950_s5 + $0x68] sm:$0xff]  }
  0xfd   :  { %v408_v29 = vmax.f32 %v323_v22, 0.0  ;;  %806 = vmatprep.mubr.bf16.mxu1 %v1591_v3  ;;  %v410_v31 = vmax.f32 %v376_v25, 0.0  ;;  %v423_v10 = vcombine.high %v415_v38, %v415_v38  ;;  %776 = vmatprep.subr.bf16.mxu1 %v1540_v40  ;;  %v1571_v13 = vld [vmem:[%s1950_s5 + $0x60] sm:$0xff]   ;;  %v1574_v15 = vld [vmem:[%s1950_s5 + $0x90] sm:$0xff]   ;;  %v1576_v17 = vld [vmem:[%s1950_s5 + $0xd8] sm:$0xff]  }
  0xfe   :  { %v409_v32 = vmax.f32 %v325_v26, 0.0  ;;  %v411_v34 = vmax.f32 %v378_v41, 0.0  ;;  %v1573_v14 = vld [vmem:[%s1950_s5 + $0x20] sm:$0xff]   ;;  %v1577_v18 = vld [vmem:[%s1950_s5 + $0x28] sm:$0xff]   ;;  %v1578_v19 = vld [vmem:[%s1950_s5 + $0x98] sm:$0xff]  }
  0xff   :  { %v1511_v39 = vpack.c.bf16 %v408_v29, %v400_v28  ;;  %v1519_v35 = vpack.c.bf16 %v410_v31, %v402_v44  ;;  %777 = vmatpush1.bf16.msra.mxu1 %v1538_v42  ;;  %v1579_v20 = vld [vmem:[%s1950_s5 + $0x70] sm:$0xff]   ;;  %v1580_v21 = vld [vmem:[%s1950_s5 + $0xe0] sm:$0xff]   ;;  %v1583_v24 = vld [vmem:[%s1950_s5 + $0x78] sm:$0xff]  }
 0x100   :  { %v1509_v36 = vpack.c.bf16 %v409_v32, %v401_v30  ;;  %v1517_v37 = vpack.c.bf16 %v411_v34, %v403_v33  ;;  %815 = vmatprep.subr.bf16.mxu1 %v1543_v46  ;;  %v1581_v22 = vld [vmem:[%s1950_s5 + $0x30] sm:$0xff]   ;;  %v1582_v23 = vld [vmem:[%s1950_s5 + $0xa0] sm:$0xff]   ;;  %v1584_v25 = vld [vmem:[%s1950_s5 + $0xe8] sm:$0xff]  }
 0x101   :  { %v1585_v26 = vld [vmem:[%s1950_s5 + $0x38] sm:$0xff]   ;;  %v1586_v27 = vld [vmem:[%s1950_s5 + $0xa8] sm:$0xff]   ;;  %v1587_v28 = vld [vmem:[%s1950_s5 + $0xf0] sm:$0xff]  }
 0x102   :  { %1510 = vmatprep.subr.bf16.mxu0 %v1509_v36  ;;  %v1588_v29 = vld [vmem:[%s1950_s5 + $0xb0] sm:$0xff]   ;;  %v1589_v41 = vld [vmem:[%s1950_s5 + $0xf8] sm:$0xff]  }
 0x103   :  { %v1590_v44 = vld [vmem:[%s1950_s5 + $0xb8] sm:$0xff]  }
 0x104   :  { %1512 = vmatpush1.bf16.xpose.msra.mxu0 %v1511_v39  ;;  %v982_v39 = vlaneseq  ;;  %v709_v40 = vld [vmem:[%s1951_s6] ss:$8 sm:$0xf] }
 0x105   :  { %1514 = vmatprep.subr.bf16.mxu0 %v1513_v45  ;;  %v1572_v45 = vld [vmem:[%s1950_s5 + $0xd0] sm:$0xff]  }
 0x106   :  { %v983_v34 = vshrl.u32 %v982_v39, 7 }
 0x108   :  { %v988_v42 = vsub.s32 1, %v983_v34 }
 0x10b   :  { %633 = vmatmul.mubr.f32.vlgmr.msra.gmra.mrb[16].mxu0 %v414_v43  ;;  %v1556_v43 = vld [vmem:[%s1949_s4 + $0x28] ss:$16 sps:$4 sm:$0xff]  }
 0x10c   :  { %1516 = vmatpush1.bf16.xpose.msra.mxu0 %v1515_v9  ;;  %702 = vmatprep.mubr.f32.mxu0 %v423_v10  ;;  %v1568_v9 = vld [vmem:[%s1950_s5 + $0xc8] sm:$0xff]   ;;  %v984_v10 = vsub.s32 0, %v983_v34 }
 0x10d   :  { %1518 = vmatprep.subr.bf16.mxu0 %v1517_v37 }
 0x10e   :  { %v985_v46 = vrot.slane %v709_v40, %v984_v10 }
 0x114   :  { %1520 = vmatpush1.bf16.xpose.msra.mxu0 %v1519_v35 }
 0x115   :  { %1467 = vmatprep.subr.bf16.mxu0 %v1564_v5 }
 0x11b   :  { %703 = vmatmul.mubr.f32.vlgmr.msra.gmra.mrb[16].mxu0 %v415_v38 }
 0x11c   :  { %1468 = vmatpush3.bf16.msra.mxu0 %v1566_v7 }
 0x11d   :  { %1469 = vmatprep.subr.bf16.mxu0 %v1568_v9 }
 0x120   :  { %1470 = vmatpush3.bf16.msra.mxu0 %v1570_v12 }
 0x121   :  { %1471 = vmatprep.subr.bf16.mxu0 %v1572_v45 }
 0x124   :  { %1472 = vmatpush3.bf16.msra.mxu0 %v1574_v15 }
 0x125   :  { %1473 = vmatprep.subr.bf16.mxu0 %v1576_v17 }
 0x128   :  { %1474 = vmatpush3.bf16.msra.mxu0 %v1578_v19 }
 0x129   :  { %1475 = vmatprep.subr.bf16.mxu0 %v1580_v21 }
 0x12c   :  { %1476 = vmatpush3.bf16.msra.mxu0 %v1582_v23 }
 0x12d   :  { %1477 = vmatprep.subr.bf16.mxu0 %v1584_v25 }
 0x130   :  { %1478 = vmatpush3.bf16.msra.mxu0 %v1586_v27 }
 0x131   :  { %1479 = vmatprep.subr.bf16.mxu0 %v1587_v28  ;;  %v712_v28 = vld [vmem:[%s1951_s6 + $0x3] ss:$0 sm:$0xff] }
 0x134   :  { %1480 = vmatpush3.bf16.msra.mxu0 %v1588_v29 }
 0x135   :  { %1481 = vmatprep.subr.bf16.mxu0 %v1589_v41 }
 0x138   :  { %1482 = vmatpush3.bf16.msra.mxu0 %v1590_v44 }
 0x1cd   :  { %v494_v47 = vpop.f32.mrb[16].mxu1 }
 0x1ce   :  { %v496_v48 = vpop.f32.mrb[17].mxu1 }
 0x1cf   :  { %v989_v48 = vrot.slane %v709_v40, %v988_v42 }
 0x1ee   :  { %v704_v49 = vpop.f32.mrb[16].mxu0 }
 0x1ef   :  { %v1521_v50 = vadd.f32 %v704_v49, %v494_v47  ;;  %v706_v51 = vpop.f32.mrb[17].mxu0 }
 0x1f1   :  { %v708_v52 = vpack.c.bf16 %v1521_v50, %v1521_v50 }
 0x1f3   :  { %v730_v54 = vrot.slane %v708_v52, 1 }
 0x1f5   :  { %1401 = vmatmul.mubr.msk.bf16.vlgmr.msra.gmra.mrb[20].mxu1 %vm161_vm0, %v730_v54 }
 0x1f6   :  { %816 = vmatpush1.bf16.msra.mxu1 %v1541_v53  ;;  %847 = vmatprep.mubr.bf16.mxu1 %v1591_v3 }
 0x1f7   :  { %817 = vmatprep.subr.bf16.mxu1 %v1546_v55  ;;  %v992_v55 = vsub.s32 2, %v983_v34 }
 0x1fa   :  { %818 = vmatpush1.bf16.msra.mxu1 %v1544_v56 }
 0x1fb   :  { %899 = vmatprep.subr.bf16.mxu1 %v1549_v57  ;;  %v996_v57 = vsub.s32 3, %v983_v34 }
 0x1fd   :  { %1402 = vmatmul.mubr.msk.bf16.vlgmr.msra.gmra.mrb[24].mxu1 %vm161_vm0, %v730_v54 }
 0x1fe   :  { %900 = vmatpush1.bf16.msra.mxu1 %v1547_v58  ;;  %931 = vmatprep.mubr.bf16.mxu1 %v1591_v3 }
 0x1ff   :  { %901 = vmatprep.subr.bf16.mxu1 %v1552_v59 }
 0x202   :  { %902 = vmatpush1.bf16.msra.mxu1 %v1550_v60  ;;  %v993_v60 = vrot.slane %v709_v40, %v992_v55 }
 0x203   :  { %940 = vmatprep.subr.bf16.mxu1 %v1555_v61 }
 0x205   :  { %1411 = vmatmul.mubr.msk.bf16.vlgmr.msra.gmra.mrb[28].mxu1 %vm161_vm0, %v708_v52 }
 0x206   :  { %941 = vmatpush1.bf16.msra.mxu1 %v1553_v62  ;;  %972 = vmatprep.mubr.bf16.mxu1 %v1591_v3  ;;  %v1562_v3 = vld [vmem:[%s1950_s5 + $0x8] sm:$0xff]  }
 0x207   :  { %942 = vmatprep.subr.bf16.mxu1 %v1558_v63  ;;  %v997_v63 = vrot.slane %v709_v40, %v996_v57 }
 0x20a   :  { %943 = vmatpush1.bf16.msra.mxu1 %v1556_v43 }
 0x20b   :  { %1445 = vmatprep.subr.bf16.mxu1 %v1559_v0 }
 0x20d   :  { %1412 = vmatmul.mubr.msk.bf16.vlgmr.msra.gmra.mrb[32].mxu1 %vm161_vm0, %v708_v52 }
 0x20e   :  { %1446 = vmatpush3.bf16.msra.mxu1 %v1560_v1 }
 0x20f   :  { %1447 = vmatprep.subr.bf16.mxu1 %v1561_v2 }
 0x212   :  { %1448 = vmatpush3.bf16.msra.mxu1 %v1562_v3 }
 0x213   :  { %1449 = vmatprep.subr.bf16.mxu1 %v1563_v4 }
 0x216   :  { %1450 = vmatpush3.bf16.msra.mxu1 %v1565_v6 }
 0x217   :  { %1451 = vmatprep.subr.bf16.mxu1 %v1567_v8 }
 0x21a   :  { %1452 = vmatpush3.bf16.msra.mxu1 %v1569_v11 }
 0x21b   :  { %1453 = vmatprep.subr.bf16.mxu1 %v1571_v13 }
 0x21e   :  { %1454 = vmatpush3.bf16.msra.mxu1 %v1573_v14 }
 0x21f   :  { %1455 = vmatprep.subr.bf16.mxu1 %v1575_v16  ;;  %v710_v16 = vld [vmem:[%s1951_s6 + $0x1] ss:$0 sm:$0xff] }
 0x222   :  { %1456 = vmatpush3.bf16.msra.mxu1 %v1577_v18 }
 0x223   :  { %1457 = vmatprep.subr.bf16.mxu1 %v1579_v20 }
 0x226   :  { %1458 = vmatpush3.bf16.msra.mxu1 %v1581_v22 }
 0x227   :  { %1459 = vmatprep.subr.bf16.mxu1 %v1583_v24  ;;  %v711_v24 = vld [vmem:[%s1951_s6 + $0x2] ss:$0 sm:$0xff] }
 0x22a   :  { %1460 = vmatpush3.bf16.msra.mxu1 %v1585_v26 }
 0x2c8   :  { %v808_v30 = vpop.f32.mrb[20].mxu1 }
 0x2c9   :  { %v810_v31 = vpop.f32.mrb[21].mxu1 }
 0x2ca   :  { %v812_v32 = vpop.f32.mrb[22].mxu1 }
 0x2cb   :  { %v813_v33 = vpop.f32.mrb[23].mxu1 }
 0x2d0   :  { %v849_v35 = vpop.f32.mrb[24].mxu1 }
 0x2d1   :  { %v851_v36 = vpop.f32.mrb[25].mxu1 }
 0x2d2   :  { %v853_v37 = vpop.f32.mrb[26].mxu1 }
 0x2d3   :  { %v854_v38 = vpop.f32.mrb[27].mxu1 }
 0x2d8   :  { %v933_v47 = vpop.f32.mrb[28].mxu1 }
 0x2d9   :  { %v934_v49 = vadd.f32 %v933_v47, %v808_v30  ;;  %v935_v50 = vpop.f32.mrb[29].mxu1 }
 0x2da   :  { %v936_v51 = vadd.f32 %v935_v50, %v810_v31  ;;  %v937_v52 = vpop.f32.mrb[30].mxu1 }
 0x2db   :  { %v1002_v53 = vadd.f32 %v985_v46, %v934_v49  ;;  %v938_v54 = vpop.f32.mrb[31].mxu1 }
 0x2dc   :  { %v1003_v56 = vadd.f32 %v989_v48, %v936_v51 }
 0x2dd   :  { %v1006_v58 = vmax.f32 %v1002_v53, 0.0 }
 0x2de   :  { %v1007_v59 = vmax.f32 %v1003_v56, 0.0 }
 0x2df   :  { %v1010_v43 = vpack.c.bf16 %v1006_v58, %v1006_v58 }
 0x2e0   :  { %v1011_v61 = vpack.c.bf16 %v1007_v59, %v1007_v59  ;;  %v974_v62 = vpop.f32.mrb[32].mxu1 }
 0x2e1   :  { %v975_v0 = vadd.f32 %v974_v62, %v849_v35  ;;  %v976_v1 = vpop.f32.mrb[33].mxu1 }
 0x2e2   :  { %v977_v2 = vadd.f32 %v976_v1, %v851_v36  ;;  %v978_v3 = vpop.f32.mrb[34].mxu1  ;;  %1302 = vmatprep.mubr.bf16.mxu1 %v1011_v61 }
 0x2e3   :  { %v1004_v4 = vadd.f32 %v993_v60, %v975_v0  ;;  %v979_v5 = vpop.f32.mrb[35].mxu1  ;;  %1303 = vmatmul.mubr.bf16.vlgmr.msra.gmra.mrb[36].mxu1 %v1010_v43 }
 0x2e4   :  { %v1005_v6 = vadd.f32 %v997_v63, %v977_v2 }
 0x2e5   :  { %v1008_v7 = vmax.f32 %v1004_v4, 0.0 }
 0x2e6   :  { %v1009_v8 = vmax.f32 %v1005_v6, 0.0 }
 0x2e7   :  { %v1012_v11 = vpack.c.bf16 %v1008_v7, %v1008_v7 }
 0x2e8   :  { %v1013_v9 = vpack.c.bf16 %v1009_v8, %v1009_v8 }
 0x2ea   :  { %1342 = vmatprep.mubr.bf16.mxu0 %v1013_v9 }
 0x2eb   :  { %1343 = vmatmul.mubr.bf16.vlgmr.msra.gmra.mrb[20].mxu0 %v1012_v11 }
 0x3b6   :  { %v1461_v12 = vpop.f32.mrb[36].mxu1 }
 0x3b7   :  { %v1462_v13 = vpop.f32.mrb[37].mxu1 }
 0x3b8   :  { %v1463_v45 = vadd.f32 %v1462_v13, %v1461_v12  ;;  %v1464_v14 = vpop.f32.mrb[38].mxu1 }
 0x3b9   :  { %v1465_v15 = vpop.f32.mrb[39].mxu1 }
 0x3ba   :  { %v1305_v19 = vadd.f32 %v1463_v45, %v710_v16 }
 0x3be   :  { %v1483_v17 = vpop.f32.mrb[20].mxu0 }
 0x3bf   :  { %v1484_v18 = vpop.f32.mrb[21].mxu0 }
 0x3c0   :  { %v1485_v20 = vadd.f32 %v1484_v18, %v1483_v17  ;;  %v1486_v21 = vpop.f32.mrb[22].mxu0 }
 0x3c1   :  { %v1487_v22 = vpop.f32.mrb[23].mxu0 }
 0x3c2   :  { %v1345_v23 = vadd.f32 %v1485_v20, %v1305_v19 }
 0x3c4   :  { %v1350_v25 = vmax.f32 %v1345_v23, 0.0 }
 0x3c6   :  { %v1351_v26 = vmul.f32 %v1350_v25, %v711_v24 }
 0x3c8   :  { %v1353_v27 = vsel %vm1352_vm1, %v1351_v26, 0.0 }
 0x3c9   :  { %1354 = vadd.xlane.f32.xlu0 %v1353_v27 }
 0x456   :  { %v1355_v29 = vpop.xlane.xlu0 %1354 }
 0x457   :  { %v1356_v41 = vadd.f32 %v1355_v29, %v712_v28 }
 0x459   :  { %1359 = vperm.xlu1 %1528, %v1356_v41  }
 0x4d8   :  { %v1360_v44 = vpop.permute.xlu1 %1359 }
 0x4d9   :  { %1362 = vst [vmem:[%s1952_s7] sm:$0x3] %v1360_v44 }

</bundles_post_ra>
